<compile_context>
chip_gen: v6e
topology: v6e:2x2x1
jax: 0.10.0
libtpu: 0.0.40
codegen_flags: <defaults>
</compile_context>

<pallas_src>
import jax
import jax.numpy as jnp
from jax.experimental import pallas as pl
from jax.experimental.pallas import tpu as pltpu


def _round_up(x, m):
    return (x + m - 1) // m * m


def _choose_tile_h(H, W, Kp, Coutp, vmem_budget_bytes=16 * 1024 * 1024):
    """Largest even row-tile whose double-buffered kernel-A working set fits the budget,
    preferring >= 2 tiles per image for pipeline depth. Keeps blocks (8,128)-legal."""
    def tile_bytes(th):
        # double-buffered xcol block (f32) + conv block (bf16)
        return 2 * th * W * (Kp * 4 + Coutp * 2)

    cands = [th for th in range(H, 1, -1)
             if th % 2 == 0 and H % th == 0 and (th * W) % 8 == 0]
    if not cands:
        return H                                   # full-image tile: always legal
    fitting = [th for th in cands if tile_bytes(th) <= vmem_budget_bytes] or [cands[-1]]
    for th in fitting:
        if th < H:
            return th                              # >= 2 row-tiles per image
    return fitting[0]


def _conv_stats_kernel(xcol_ref, w_ref, conv_ref, sum_ref, ssq_ref):
    """Conv-as-matmul on one (image, row-tile) block + per-image channel statistics.

    Grid = (N, num_row_tiles). The stats blocks are indexed by n only and revisited
    across the (arbitrary) row-tile axis, so the N axis stays 'parallel'.
    """
    t = pl.program_id(1)

    @pl.when(t == 0)
    def _():
        sum_ref[...] = jnp.zeros_like(sum_ref)
        ssq_ref[...] = jnp.zeros_like(ssq_ref)

    y = jnp.dot(xcol_ref[0], w_ref[...], preferred_element_type=jnp.float32)
    tile_h, width = conv_ref.shape[1], conv_ref.shape[2]
    conv_ref[0] = y.reshape(tile_h, width, -1).astype(conv_ref.dtype)   # bf16 -> HBM
    sum_ref[0] += jnp.sum(y, axis=0, keepdims=True)                     # stats from f32
    ssq_ref[0] += jnp.sum(y * y, axis=0, keepdims=True)


def _norm_relu_pool_kernel(conv_ref, scale_ref, shift_ref, out_ref):
    """Fused BatchNorm affine + ReLU + 2x2 average pool (reshape + VPU adds)."""
    _, tile_h, width, c = conv_ref.shape
    y = conv_ref[0].astype(jnp.float32)            # (tile_h, W, Coutp)
    y = y * scale_ref[...] + shift_ref[...]
    y = jnp.maximum(y, 0.0)
    # pool along H pairs: pure outer-axis split + add
    y = y.reshape(tile_h // 2, 2, width, c)
    y = jnp.sum(y, axis=1)                         # (tile_h//2, W, Coutp)
    # pool along W pairs
    y = y.reshape(tile_h // 2, width // 2, 2, c)
    y = jnp.sum(y, axis=2) * 0.25                  # (tile_h//2, W//2, Coutp)
    out_ref[0] = y


def down_block_2d(x_nchw, w, b, gamma, beta, eps=1e-5):
    """Forward of DownBlock2d with training-mode BatchNorm statistics.

    The conv bias `b` is accepted for signature parity but unused: BatchNorm's batch-mean
    subtraction cancels a per-channel constant exactly, so dropping it is a no-op.
    """
    del b
    N, Cin, H, W = x_nchw.shape
    Cout, wcin, KH, KW = w.shape
    assert KH == 3 and KW == 3 and wcin == Cin
    assert H % 2 == 0 and W % 2 == 0

    K = KH * KW * Cin
    Kp = _round_up(K, 128)         # MXU contraction dim, lane-aligned
    Coutp = _round_up(Cout, 128)   # lane-dense output channels

    # ---- glue: NCHW -> NHWC, pad, im2col (patch order (kh, kw, ci)), zero-pad K ----
    # TODO(synk): build the 9 patches in-kernel from a haloed row slab to avoid the ~9x
    # HBM inflation of the materialized im2col matrix at large Cin/H/W.
    x = jnp.transpose(x_nchw, (0, 2, 3, 1)).astype(jnp.float32)
    xp = jnp.pad(x, ((0, 0), (1, 1), (1, 1), (0, 0)))
    patches = [xp[:, kh:kh + H, kw:kw + W, :] for kh in range(KH) for kw in range(KW)]
    xcol = jnp.concatenate(patches, axis=-1).reshape(N, H * W, K)
    xcol = jnp.pad(xcol, ((0, 0), (0, 0), (0, Kp - K)))

    # PyTorch weight (Cout, Cin, kh, kw) -> (kh, kw, Cin, Cout) -> (K, Cout), zero-padded.
    wcol = jnp.transpose(w, (2, 3, 1, 0)).reshape(K, Cout).astype(jnp.float32)
    wcol = jnp.pad(wcol, ((0, Kp - K), (0, Coutp - Cout)))

    HW = H * W
    tile_h = _choose_tile_h(H, W, Kp, Coutp)
    tile_hw = tile_h * W
    n_tiles = H // tile_h
    OH, OW = H // 2, W // 2

    vmem_limit = 32 * 1024 * 1024

    # ---- kernel A: conv matmul + per-image channel statistics ----
    conv, psum, pssq = pl.pallas_call(
        _conv_stats_kernel,
        out_shape=(
            jax.ShapeDtypeStruct((N, H, W, Coutp), jnp.bfloat16),   # bf16 intermediate
            jax.ShapeDtypeStruct((N, 1, Coutp), jnp.float32),       # per-image sum
            jax.ShapeDtypeStruct((N, 1, Coutp), jnp.float32),       # per-image sum of squares
        ),
        grid_spec=pltpu.PrefetchScalarGridSpec(
            num_scalar_prefetch=0,
            grid=(N, n_tiles),
            in_specs=[
                pl.BlockSpec((1, tile_hw, Kp), lambda n, t: (n, t, 0)),
                pl.BlockSpec((Kp, Coutp), lambda n, t: (0, 0)),
            ],
            out_specs=[
                pl.BlockSpec((1, tile_h, W, Coutp), lambda n, t: (n, t, 0, 0)),
                pl.BlockSpec((1, 1, Coutp), lambda n, t: (n, 0, 0)),   # resident across t
                pl.BlockSpec((1, 1, Coutp), lambda n, t: (n, 0, 0)),   # resident across t
            ],
        ),
        compiler_params=pltpu.CompilerParams(
            dimension_semantics=("parallel", "arbitrary"),
            vmem_limit_bytes=vmem_limit),
    )(xcol, wcol)

    # ---- glue: reduce per-image partials -> training-mode BN scale/shift ----
    cnt = jnp.float32(N * HW)
    mean = jnp.sum(psum[:, 0, :], axis=0, keepdims=True) / cnt              # (1, Coutp)
    var = jnp.sum(pssq[:, 0, :], axis=0, keepdims=True) / cnt - mean * mean
    gamma_p = jnp.pad(gamma.astype(jnp.float32), (0, Coutp - Cout)).reshape(1, Coutp)
    beta_p = jnp.pad(beta.astype(jnp.float32), (0, Coutp - Cout)).reshape(1, Coutp)
    scale = gamma_p * jax.lax.rsqrt(var + eps)
    shift = beta_p - mean * scale

    # ---- kernel B: fused normalize + ReLU + 2x2 average pool ----
    out = pl.pallas_call(
        _norm_relu_pool_kernel,
        out_shape=jax.ShapeDtypeStruct((N, OH, OW, Coutp), jnp.float32),
        grid_spec=pltpu.PrefetchScalarGridSpec(
            num_scalar_prefetch=0,
            grid=(N, n_tiles),
            in_specs=[
                pl.BlockSpec((1, tile_h, W, Coutp), lambda n, t: (n, t, 0, 0)),
                pl.BlockSpec((1, Coutp), lambda n, t: (0, 0)),
                pl.BlockSpec((1, Coutp), lambda n, t: (0, 0)),
            ],
            out_specs=pl.BlockSpec((1, tile_h // 2, OW, Coutp), lambda n, t: (n, t, 0, 0)),
        ),
        compiler_params=pltpu.CompilerParams(
            dimension_semantics=("parallel", "parallel"),
            vmem_limit_bytes=vmem_limit),
    )(conv, scale, shift)

    # (N, OH, OW, Coutp) -> slice real channels -> NCHW
    return jnp.transpose(out[:, :, :, :Cout], (0, 3, 1, 2))


def _reference(x_nchw, w, b, gamma, beta, eps=1e-5):
    """Pure-JAX reference matching the PyTorch forward (training-mode BatchNorm)."""
    y = jax.lax.conv_general_dilated(
        x_nchw, w, window_strides=(1, 1), padding=((1, 1), (1, 1)),
        dimension_numbers=("NCHW", "OIHW", "NCHW"))
    y = y + b.reshape(1, -1, 1, 1)
    mean = jnp.mean(y, axis=(0, 2, 3), keepdims=True)
    var = jnp.mean((y - mean) ** 2, axis=(0, 2, 3), keepdims=True)
    y = (y - mean) / jnp.sqrt(var + eps) * gamma.reshape(1, -1, 1, 1) + beta.reshape(1, -1, 1, 1)
    y = jnp.maximum(y, 0.0)
    N, C, H, W = y.shape
    return y.reshape(N, C, H // 2, 2, W // 2, 2).mean(axis=(3, 5))


if __name__ == "__main__":
    key = jax.random.PRNGKey(0)
    k1, k2, k3, k4, k5 = jax.random.split(key, 5)
    N, Cin, Cout, H, W = 2, 4, 8, 16, 16

    x = jax.random.normal(k1, (N, Cin, H, W), jnp.float32)
    fan_in = Cin * 3 * 3
    bound = 1.0 / (fan_in ** 0.5)
    w = jax.random.uniform(k2, (Cout, Cin, 3, 3), jnp.float32, -bound, bound)
    b = jax.random.uniform(k3, (Cout,), jnp.float32, -bound, bound)
    gamma = 1.0 + 0.1 * jax.random.normal(k4, (Cout,), jnp.float32)
    beta = 0.1 * jax.random.normal(k5, (Cout,), jnp.float32)

    out = jax.block_until_ready(down_block_2d(x, w, b, gamma, beta))
    ref = _reference(x, w, b, gamma, beta)

    assert out.shape == (N, Cout, H // 2, W // 2), out.shape
    # Tolerance reflects the bf16 intermediate conv activations (stats stay f32).
    max_err = float(jnp.max(jnp.abs(out - ref)))
    assert jnp.allclose(out, ref, atol=3e-2, rtol=3e-2), max_err
    print("KERNEL_OK")
</pallas_src>

<mosaic_0001>
module attributes {stable_mosaic.version = 11 : i64} {
  func.func @_conv_stats_kernel(%arg0: i32, %arg1: i32, %arg2: memref<1x128x128xf32, #tpu.memory_space<vmem>>, %arg3: memref<128x128xf32, #tpu.memory_space<vmem>>, %arg4: memref<1x8x16x128xbf16, #tpu.memory_space<vmem>>, %arg5: memref<1x1x128xf32, #tpu.memory_space<vmem>>, %arg6: memref<1x1x128xf32, #tpu.memory_space<vmem>>) attributes {dimension_semantics = [#tpu.dimension_semantics<parallel>, #tpu.dimension_semantics<arbitrary>], iteration_bounds = array<i64: 2, 2>, scalar_prefetch = 0 : i64, scratch_operands = 0 : i64, tpu.core_type = #tpu.core_type<tc>, window_params = [{transform_indices = @transform_0, window_bounds = array<i64: 1, 128, 128>}, {pipeline_mode = #tpu.pipeline_mode<synchronous>, transform_indices = @transform_1, window_bounds = array<i64: 128, 128>}, {transform_indices = @transform_2, window_bounds = array<i64: 1, 8, 16, 128>}, {transform_indices = @transform_3, window_bounds = array<i64: 1, 1, 128>}, {transform_indices = @transform_4, window_bounds = array<i64: 1, 1, 128>}]} {
    %c0_i32 = arith.constant 0 : i32
    %0 = arith.cmpi eq, %arg1, %c0_i32 : i32
    %1 = arith.extui %0 : i1 to i32
    %c0_i32_0 = arith.constant 0 : i32
    %2 = arith.cmpi ne, %1, %c0_i32_0 : i32
    scf.if %2 {
      %cst_23 = arith.constant 0.000000e+00 : f32
      %29 = vector.broadcast %cst_23 : f32 to vector<1x1x128xf32>
      %c0_24 = arith.constant 0 : index
      %c0_25 = arith.constant 0 : index
      %c0_26 = arith.constant 0 : index
      %30 = vector.load %arg5[%c0_24, %c0_25, %c0_26] : memref<1x1x128xf32, #tpu.memory_space<vmem>>, vector<1x1x128xf32>
      tpu.vector_store %arg5[%c0_24, %c0_25, %c0_26], %29 {strides = array<i32>} : memref<1x1x128xf32, #tpu.memory_space<vmem>>, vector<1x1x128xf32>,
      %cst_27 = arith.constant 0.000000e+00 : f32
      %31 = vector.broadcast %cst_27 : f32 to vector<1x1x128xf32>
      %c0_28 = arith.constant 0 : index
      %c0_29 = arith.constant 0 : index
      %c0_30 = arith.constant 0 : index
      %32 = vector.load %arg6[%c0_28, %c0_29, %c0_30] : memref<1x1x128xf32, #tpu.memory_space<vmem>>, vector<1x1x128xf32>
      tpu.vector_store %arg6[%c0_28, %c0_29, %c0_30], %31 {strides = array<i32>} : memref<1x1x128xf32, #tpu.memory_space<vmem>>, vector<1x1x128xf32>,
    } else {
    }
    %c0 = arith.constant 0 : index
    %c0_1 = arith.constant 0 : index
    %c0_2 = arith.constant 0 : index
    %3 = vector.load %arg2[%c0, %c0_1, %c0_2] : memref<1x128x128xf32, #tpu.memory_space<vmem>>, vector<1x128x128xf32>
    %4 = vector.shape_cast %3 : vector<1x128x128xf32> to vector<128x128xf32>
    %c0_3 = arith.constant 0 : index
    %c0_4 = arith.constant 0 : index
    %5 = vector.load %arg3[%c0_3, %c0_4] : memref<128x128xf32, #tpu.memory_space<vmem>>, vector<128x128xf32>
    %cst = arith.constant dense<0.000000e+00> : vector<128x128xf32>
    %6 = tpu.matmul %4, %5, %cst {dimension_numbers = #tpu.dot_dimension_numbers<[1], [0], [0], [1], [0, 0, 1, 1], [], []>} : vector<128x128xf32>, vector<128x128xf32>, vector<128x128xf32> -> vector<128x128xf32>
    %7 = vector.shape_cast %6 : vector<128x128xf32> to vector<8x16x128xf32>
    %8 = arith.truncf %7 : vector<8x16x128xf32> to vector<8x16x128xbf16>
    %c0_5 = arith.constant 0 : index
    %c0_6 = arith.constant 0 : index
    %c0_7 = arith.constant 0 : index
    %c0_8 = arith.constant 0 : index
    %9 = vector.load %arg4[%c0_5, %c0_6, %c0_7, %c0_8] : memref<1x8x16x128xbf16, #tpu.memory_space<vmem>>, vector<1x8x16x128xbf16>
    %10 = vector.shape_cast %9 : vector<1x8x16x128xbf16> to vector<8x16x128xbf16>
    %11 = vector.shape_cast %8 : vector<8x16x128xbf16> to vector<1x8x16x128xbf16>
    tpu.vector_store %arg4[%c0_5, %c0_6, %c0_7, %c0_8], %11 {strides = array<i32>} : memref<1x8x16x128xbf16, #tpu.memory_space<vmem>>, vector<1x8x16x128xbf16>,
    %c0_9 = arith.constant 0 : index
    %c0_10 = arith.constant 0 : index
    %c0_11 = arith.constant 0 : index
    %12 = vector.load %arg5[%c0_9, %c0_10, %c0_11] : memref<1x1x128xf32, #tpu.memory_space<vmem>>, vector<1x1x128xf32>
    %13 = vector.shape_cast %12 : vector<1x1x128xf32> to vector<1x128xf32>
    %cst_12 = arith.constant dense<0.000000e+00> : vector<128xf32>
    %14 = vector.multi_reduction <add>, %6, %cst_12 [0] : vector<128x128xf32> to vector<128xf32>
    %15 = vector.shape_cast %14 : vector<128xf32> to vector<1x128xf32>
    %16 = arith.addf %13, %15 : vector<1x128xf32>
    %c0_13 = arith.constant 0 : index
    %c0_14 = arith.constant 0 : index
    %c0_15 = arith.constant 0 : index
    %17 = vector.load %arg5[%c0_13, %c0_14, %c0_15] : memref<1x1x128xf32, #tpu.memory_space<vmem>>, vector<1x1x128xf32>
    %18 = vector.shape_cast %17 : vector<1x1x128xf32> to vector<1x128xf32>
    %19 = vector.shape_cast %16 : vector<1x128xf32> to vector<1x1x128xf32>
    tpu.vector_store %arg5[%c0_13, %c0_14, %c0_15], %19 {strides = array<i32>} : memref<1x1x128xf32, #tpu.memory_space<vmem>>, vector<1x1x128xf32>,
    %c0_16 = arith.constant 0 : index
    %c0_17 = arith.constant 0 : index
    %c0_18 = arith.constant 0 : index
    %20 = vector.load %arg6[%c0_16, %c0_17, %c0_18] : memref<1x1x128xf32, #tpu.memory_space<vmem>>, vector<1x1x128xf32>
    %21 = vector.shape_cast %20 : vector<1x1x128xf32> to vector<1x128xf32>
    %22 = arith.mulf %6, %6 : vector<128x128xf32>
    %cst_19 = arith.constant dense<0.000000e+00> : vector<128xf32>
    %23 = vector.multi_reduction <add>, %22, %cst_19 [0] : vector<128x128xf32> to vector<128xf32>
    %24 = vector.shape_cast %23 : vector<128xf32> to vector<1x128xf32>
    %25 = arith.addf %21, %24 : vector<1x128xf32>
    %c0_20 = arith.constant 0 : index
    %c0_21 = arith.constant 0 : index
    %c0_22 = arith.constant 0 : index
    %26 = vector.load %arg6[%c0_20, %c0_21, %c0_22] : memref<1x1x128xf32, #tpu.memory_space<vmem>>, vector<1x1x128xf32>
    %27 = vector.shape_cast %26 : vector<1x1x128xf32> to vector<1x128xf32>
    %28 = vector.shape_cast %25 : vector<1x128xf32> to vector<1x1x128xf32>
    tpu.vector_store %arg6[%c0_20, %c0_21, %c0_22], %28 {strides = array<i32>} : memref<1x1x128xf32, #tpu.memory_space<vmem>>, vector<1x1x128xf32>,
    return
  }
  func.func @transform_0(%arg0: i32, %arg1: i32) -> (i32, i32, i32) {
    %c0_i32 = arith.constant 0 : i32
    %c0_i32_0 = arith.constant 0 : i32
    return %arg0, %arg1, %c0_i32 : i32, i32, i32
  }
  func.func @transform_1(%arg0: i32, %arg1: i32) -> (i32, i32) {
    %c0_i32 = arith.constant 0 : i32
    %c0_i32_0 = arith.constant 0 : i32
    %c0_i32_1 = arith.constant 0 : i32
    return %c0_i32, %c0_i32_0 : i32, i32
  }
  func.func @transform_2(%arg0: i32, %arg1: i32) -> (i32, i32, i32, i32) {
    %c0_i32 = arith.constant 0 : i32
    %c0_i32_0 = arith.constant 0 : i32
    %c0_i32_1 = arith.constant 0 : i32
    return %arg0, %arg1, %c0_i32, %c0_i32_0 : i32, i32, i32, i32
  }
  func.func @transform_3(%arg0: i32, %arg1: i32) -> (i32, i32, i32) {
    %c0_i32 = arith.constant 0 : i32
    %c0_i32_0 = arith.constant 0 : i32
    %c0_i32_1 = arith.constant 0 : i32
    return %arg0, %c0_i32, %c0_i32_0 : i32, i32, i32
  }
  func.func @transform_4(%arg0: i32, %arg1: i32) -> (i32, i32, i32) {
    %c0_i32 = arith.constant 0 : i32
    %c0_i32_0 = arith.constant 0 : i32
    %c0_i32_1 = arith.constant 0 : i32
    return %arg0, %c0_i32, %c0_i32_0 : i32, i32, i32
  }
}

</mosaic_0001>

<bundles_post_ra>
// kernel: tpu_custom_call.1
= control target key start
LH: loop header
LB: loop body
LE: loop exit
PB: predicated region body
PF: predicated region fallthrough
CT: control target
= control target key end

     0   :  { %s1806_s0 = inlined_call_operand.hbm [shape: f32[2,256,128], index: 0, kind: input, shape index: {}]   ;;  %s1807_s1 = inlined_call_operand.hbm [shape: f32[128,128], index: 1, kind: input, shape index: {}]   ;;  %s1808_s2 = inlined_call_operand.hbm [shape: bf16[2,16,16,128], index: 2, kind: output, shape index: {0}]   ;;  %s1809_s3 = inlined_call_operand.hbm [shape: f32[2,1,128], index: 3, kind: output, shape index: {1}]   ;;  %s1810_s4 = inlined_call_operand.hbm [shape: f32[2,1,128], index: 4, kind: output, shape index: {2}]  }
   0x1   :  { %1827 = sst [smem:[#allocation21_spill]] %s1807_s1 }
   0x2   :  { %1828 = sst [smem:[#allocation22_spill]] %s1808_s2 }
   0x3   :  { %1829 = sst [smem:[#allocation23_spill]] %s1809_s3 }
   0x4   :  { %1830 = sst [smem:[#allocation24_spill]] %s1810_s4 }
   0x5   :  { %10 = vsyncpa [#allocation3], 0 }
   0x6   :  { %12 = vsyncpa [#allocation3 + $0x1], 0 }
   0x7   :  { %13 = vsyncpa [#allocation6], 0 }
   0x8   :  { %14 = vsyncpa [#allocation4], 0 }
   0x9   :  { %16 = vsyncpa [#allocation4 + $0x1], 0 }
   0xa   :  { %17 = vsyncpa [#allocation9], 0 }
   0xb   :  { %19 = vsyncpa [#allocation9 + $0x1], 0  ;;  %s1420_s15 = smov 0   ;;  %s1422_s16 = smov 0  }
   0xc   :  { %s1424_s17 = smov 0   ;;  %s1426_s18 = smov 0  }
   0xd   :  { %s1428_s19 = smov 0   ;;  %s1430_s20 = smov 0  }
   0xe   :  { %s1432_s21 = smov 0   ;;  %s1434_s22 = smov 0  }
   0xf   :  { %s1436_s23 = smov 0   ;;  %s1438_s24 = smov 0  }
  0x10   :  { %s1440_s25 = smov 0  }
  0x11 LB: > { %1831 = sst [smem:[#allocation15_spill]] %s1355_s18  ;;  %s1474_s26 = sadd.s32 4294967295, %s1383_s25   ;;  %s1383_s25 = sphi %s1440_s25, %s25_s25   ;;  %s1379_s24 = sphi %s1438_s24, %s1872_s24   ;;  %s1375_s23 = sphi %s1436_s23, %s1871_s23   ;;  %s1371_s22 = sphi %s1434_s22, %s1870_s22   ;;  %s1367_s21 = sphi %s1432_s21, %s1869_s21   ;;  %s1363_s20 = sphi %s1430_s20, %s1868_s20   ;;  %s1359_s19 = sphi %s1428_s19, %s1867_s19   ;;  %s1355_s18 = sphi %s1426_s18, %s1866_s18   ;;  %s1351_s17 = sphi %s1424_s17, %s1865_s17   ;;  %s1347_s16 = sphi %s1422_s16, %s1864_s16   ;;  %s1343_s15 = sphi %s1420_s15, %s1863_s15  }
  0x12   : > { %s1813_s27 = sadd.s32 4294967294, %s1383_s25   ;;  %p59_p0 = scmp.ne.s32.totalorder %s1359_s19, %s1355_s18 }
  0x13   : > { %p60_p1 = scmp.eq.s32.totalorder %s1474_s26, 0  ;;  %p1811_p2 = scmp.eq.s32.totalorder %s1474_s26, 3 }
  0x14   : > { %p112_p3 = scmp.eq.s32.totalorder %s1813_s27, 3  ;;  %p131_p6 = scmp.ne.s32.totalorder %s1351_s17, %s1347_s16 }
  0x15   : > { %p1485_p4 = por %p60_p1, %p59_p0  ;;  %p137_p7 = scmp.ne.s32.totalorder %s1347_s16, %s1343_s15 }
  0x16   : > { %p1490_p5 = por %p112_p3, %p59_p0  ;;  %p800_p8 = scmp.ge.s32.totalorder %s1383_s25, 1 }
  0x17   : > { %p1500_p9 = por %p131_p6, %p1811_p2  ;;  %p171_p10 = scmp.lt.s32.totalorder %s1383_s25, 5 }
  0x18   : > { %s1833_s30 = scalar_select %p1490_p5, 1, 0 }
  0x19   : > { %s1835_s5 = scalar_select %p1500_p9, 1, 0 }
  0x1a   : > { %1834 = sst [smem:[#allocation16_spill]] %s1833_s30  ;;  %p1505_p11 = por %p137_p7, %p112_p3 }
  0x1b   : > { %1836 = sst [smem:[#allocation17_spill]] %s1835_s5  ;;  %p1509_p12 = pnand %p800_p8, %p171_p10 }
  0x1c   : > { %s1837_s6 = scalar_select %p1505_p11, 1, 0 }
  0x1d   : > { %s1385_s8 = smov [#allocation5]   ;;  %p1033_p13 = pneg %p1509_p12 }
  0x1e   : > { %1838 = sst [smem:[#allocation18_spill]] %s1837_s6  ;;  %s183_s9 = sshll.u32 %s1385_s8, 4  ;;  %s184_s9 = int_to_ptr.vmem [resolvable:$true] %s183_s9 }
  0x1f   : > { %p1034_p0 = pnand %p1033_p13, %p60_p1  ;;  %s1160_s10 = scalar_lea.vmem %s184_s9, 2048 }
  0x20   : > { %p1161_p2 = scmp.ne.s32.totalorder %s184_s9, %s1160_s10  ;;  %p1168_p7 = scmp.lt.s32.totalorder %s184_s9, %s184_s9 }
  0x21   : > { %p1151_p6 = pneg %p1034_p0  ;;  %p1169_p9 = scmp.lt.s32.totalorder %s1160_s10, %s1160_s10 }
  0x23   : > { %p1163_p5 = pnand %p1161_p2, %p1151_p6  ;;  %p1170_p11 = por %p1169_p9, %p1168_p7 }
  0x25   : > { %p1164_p3 = pneg %p1163_p5 }
  0x27   : > { %p1171_p8 = pnand %p1170_p11, %p1164_p3 }
  0x29   : > { %1174 = shalt.err (!%p1171_p8)
}
  0x2a   : > { %s1814_s11 = smov 128   ;;  %s1815_s12 = smov 8  }
  0x2b   : > { %s1840_s1 = sld [smem:[#allocation21_spill]]  ;;  %s34_s15 = sadd.s32 1, %s1375_s23 }
  0x2c   : > { %s37_s8 = sadd.s32 1, %s1379_s24  ;;  %p35_p2 = scmp.ge.s32.totalorder %s34_s15, 2 }
  0x2d   : > { %s46_s10 = sadd.s32 1, %s1363_s20  ;;  %p53_p5 = scmp.ne.s32.totalorder %s1363_s20, %s1359_s19 }
  0x2e   : > { %p54_p9 = scmp.eq.s32.totalorder %s1383_s25, 0  ;;  %s1874_s15 = smov (%p35_p2, %s34_s15), 0 }
  0x2f   : > { %1841 = sst [smem:[#allocation19_spill]] %s1874_s15  ;;  %s1876_s8 = smov (!%p35_p2, %s37_s8), %s1379_s24 }
  0x30   : > { %s42_s27 = ssub.s32 %s1375_s23, %s1874_s15  ;;  %p1534_p10 = por %p54_p9, %p53_p5 }
  0x31   : > { %1036 = dma.hbm_to_vmem [thread:$0]  (!%p1034_p0), %s1840_s1, 2048, %s184_s9, [#allocation6], %s1814_s11, %s1814_s11, %s1815_s12  }
  0x32   : > { %p39_p11 = scmp.ge.s32.totalorder %s1876_s8, 2  ;;  %p1843_p13 = scmp.eq.s32.totalorder %s1474_s26, 3 }
  0x33   : > { %p1052_p6 = scmp.lt.s32.totalorder %s1383_s25, 4  ;;  %s197_s14 = sand.u32 1, %s1363_s20  }
  0x34   : > { %p1540_p0 = por %p1843_p13, %p53_p5  ;;  %s1878_s8 = smov (%p39_p11, %s1876_s8), 0 }
  0x35   : > { %s803_s11 = sshll.u32 %s197_s14, 7  ;;  %s41_s12 = ssub.s32 %s1379_s24, %s1878_s8 }
  0x36   : > { %s1844_s9 = scalar_select %p1540_p0, 1, 0 }
  0x37   : > { %s43_s29 = sor.u32 %s42_s27, %s41_s12  ;;  %p119_p3 = scmp.eq.s32.totalorder %s41_s12, 0 }
  0x38   : > { %1845 = sst [smem:[#allocation20_spill]] %s1844_s9  ;;  %p44_p7 = scmp.eq.s32.totalorder %s43_s29, 0 }
  0x39   : > { %s804_s1 = sshll.u32 %s1375_s23, 4  ;;  %s1846_s15 = sadd.s32 1, %s1351_s17 }
  0x3a   : > { %s1554_s6 = scalar_select %p119_p3, %s1351_s17, %s1846_s15  }
  0x3b   : > { %s1557_s30 = scalar_select %p44_p7, %s1363_s20, %s46_s10  }
  0x3c   : > { %s805_s18 = sshll.u32 %s1379_s24, 5  ;;  %s201_s4 = scalar_lea.vmem [#allocation2], %s803_s11 }
  0x3d   : > { %s210_s3 = sshll.u32 %s201_s4, 4  ;;  %s207_s5 = sadd.s32 %s805_s18, %s804_s1  ;;  %s211_s3 = int_to_ptr.vmem [resolvable:$true] %s210_s3 }
  0x3e   : > { %s806_s2 = sshll.u32 %s207_s5, 7  ;;  %p1564_p8 = pnand %p1052_p6, %p1534_p10 }
  0x3f   : > { %s209_s12 = scalar_lea.hbm %s1806_s0, %s806_s2  ;;  %s198_s15 = scalar_lea.sflag [#allocation3], %s197_s14 }
  0x40   : > { %p1177_p2 = pneg %p1564_p8  ;;  %s1188_s10 = scalar_lea.vmem %s211_s3, 2048 }
  0x41   : > { %p1189_p5 = scmp.ne.s32.totalorder %s211_s3, %s1188_s10  ;;  %s1388_s1 = smov [#allocation2]  }
  0x42   : > { %s1193_s4 = sshll.u32 %s1388_s1, 4  ;;  %s1194_s4 = int_to_ptr.vmem [resolvable:$false] %s1193_s4 }
  0x43   : > { %p1191_p9 = pnand %p1189_p5, %p1177_p2  ;;  %s1195_s18 = scalar_lea.vmem %s1194_s4, 4096 }
  0x44   : > { %p1196_p10 = scmp.lt.s32.totalorder %s211_s3, %s1194_s4  ;;  %p1197_p13 = scmp.lt.s32.totalorder %s1195_s18, %s1188_s10 }
  0x45   : > { %p1192_p11 = pneg %p1191_p9 }
  0x46   : > { %p1198_p6 = por %p1197_p13, %p1196_p10 }
  0x48   : > { %p1199_p3 = pnand %p1198_p6, %p1192_p11 }
  0x4a   : > { %1202 = shalt.err (!%p1199_p3)
}
  0x4b   : > { %s1848_s5 = smov 8   ;;  %s1849_s2 = smov 128  }
  0x4c   : > { %1040 = dma.hbm_to_vmem [thread:$0]  (!%p1564_p8), %s209_s12, 2048, %s211_s3, %s198_s15, %s1849_s2, %s1849_s2, %s1848_s5  }
  0x4d   : > { %222 = sbr.rel (%p1509_p12) target bundleno = 414 (0x19e), region = 28  ;;  %s1581_s11 = sand.u32 (!%p1509_p12), 1, %s1359_s19  }
  0x4e   : > { %s808_s13 = sshll.u32 (!%p1509_p12), %s1581_s11, 7  ;;  %s225_s14 = scalar_lea.sflag (!%p1509_p12), [#allocation3], %s1581_s11 }
  0x4f   : > { %s1585_s27 = scalar_lea.vmem (!%p1509_p12), [#allocation2], %s808_s13 }
  0x52   : > { %1326 = dma.done.wait (%p1485_p4), %s225_s14, 2048  }
  0x53   : > { %1328 = vsyncadd (%p1485_p4), %s225_s14, 4294965248 }
  0x54   : > { %1330 = dma.done.wait (%p60_p1), [#allocation6], 2048  }
  0x55   : > { %1332 = vsyncadd (%p60_p1), [#allocation6], 4294965248  ;;  %s810_s3 = sshll.u32 %s1581_s11, 6  ;;  %s257_s7 = sand.u32 1, %s1347_s16  }
  0x56   : > { %s1597_s9 = scalar_lea.vmem [#allocation7], %s810_s3  ;;  %s1599_s29 = scalar_lea.vmem [#allocation8], %s257_s7 }
  0x57   : > { %s1601_s12 = scalar_lea.vmem [#allocation10], %s257_s7  ;;  %p811_p12 = scmp.ne.s32.totalorder %s1367_s21, 0 }
  0x59   : > { %270 = sbr.rel (%p811_p12) target bundleno = 96 (0x60), region = 40 }
  0x5e   : > { %v1389_v0 = vmov 0.0  }
  0x5f   : > { %271 = vst [vmem:[%s1599_s29] sm:$0x1] %v1389_v0  ;;  %272 = vst [vmem:[%s1601_s12] sm:$0x1] %v1389_v0 }
  0x60 PF: > { %v304_v1 = vld [vmem:[#allocation5 + $0x78] sm:$0xff]  ;;  %v303_v2 = vld [vmem:[#allocation5 + $0x70] sm:$0xff]  ;;  %v302_v3 = vld [vmem:[#allocation5 + $0x68] sm:$0xff]  ;;  %s853_s28 = sshll.u32 %s1367_s21, 4  ;;  %s831_s15 = sshll.u32 %s1371_s22, 5 }
  0x61   : > { %933 = vmatprep.subr.mxu0 %v304_v1  ;;  %989 = vmatprep.subr.mxu1 %v304_v1  ;;  %v301_v4 = vld [vmem:[#allocation5 + $0x60] sm:$0xff]  ;;  %v300_v5 = vld [vmem:[#allocation5 + $0x58] sm:$0xff]  ;;  %v299_v6 = vld [vmem:[#allocation5 + $0x50] sm:$0xff]  ;;  %s616_s10 = sadd.s32 %s853_s28, %s831_s15  ;;  %s619_s1 = sshll.u32 %s1597_s9, 4  ;;  %s1653_s1 = int_to_ptr.vmem [resolvable:$true] %s619_s1 }
  0x62   : > { %934 = vmatpush3.msra.mxu0 %v304_v1  ;;  %1005 = vmatpush3.msra.mxu1 %v304_v1  ;;  %v298_v7 = vld [vmem:[#allocation5 + $0x48] sm:$0xff]  ;;  %v297_v8 = vld [vmem:[#allocation5 + $0x40] sm:$0xff]  ;;  %v296_v9 = vld [vmem:[#allocation5 + $0x38] sm:$0xff]  ;;  %s832_s21 = sshll.u32 %s616_s10, 6  ;;  %s1851_s2 = sld [smem:[#allocation22_spill]] }
  0x63   : > { %935 = vmatprep.subr.mxu0 %v303_v2  ;;  %990 = vmatprep.subr.mxu1 %v303_v2  ;;  %v295_v10 = vld [vmem:[#allocation5 + $0x30] sm:$0xff]  ;;  %v273_v11 = vld [vmem:[%s1585_s27] sm:$0xff]  ;;  %v294_v12 = vld [vmem:[#allocation5 + $0x28] sm:$0xff]  ;;  %s595_s14 = scalar_lea.sflag [#allocation4], %s1581_s11  ;;  %s1390_s3 = smov [#allocation7]  }
  0x64   : > { %936 = vmatpush3.msra.mxu0 %v303_v2  ;;  %1006 = vmatpush3.msra.mxu1 %v303_v2  ;;  %v293_v13 = vld [vmem:[#allocation5 + $0x20] sm:$0xff]  ;;  %v292_v14 = vld [vmem:[#allocation5 + $0x18] sm:$0xff]  ;;  %v291_v15 = vld [vmem:[#allocation5 + $0x10] sm:$0xff]  ;;  %s1207_s7 = sshll.u32 %s1390_s3, 4  ;;  %s1208_s7 = int_to_ptr.vmem [resolvable:$false] %s1207_s7 }
  0x65   : > { %937 = vmatprep.subr.mxu0 %v302_v3  ;;  %991 = vmatprep.subr.mxu1 %v302_v3  ;;  %v290_v16 = vld [vmem:[#allocation5 + $0x8] sm:$0xff]  ;;  %v289_v17 = vld [vmem:[#allocation5] sm:$0xff]  ;;  %v275_v19 = vld [vmem:[%s1585_s27 + $0x10] sm:$0xff]  ;;  %s1209_s28 = scalar_lea.vmem %s1208_s7, 2048  ;;  %p1210_p8 = scmp.lt.s32.totalorder %s1653_s1, %s1208_s7 }
  0x66   : > { %938 = vmatpush3.msra.mxu0 %v302_v3  ;;  %1007 = vmatpush3.msra.mxu1 %v302_v3  ;;  %v274_v18 = vld [vmem:[%s1585_s27 + $0x8] sm:$0xff]  ;;  %v281_v20 = vld [vmem:[%s1585_s27 + $0x40] sm:$0xff]  ;;  %v283_v22 = vld [vmem:[%s1585_s27 + $0x50] sm:$0xff] }
  0x67   : > { %939 = vmatprep.subr.mxu0 %v301_v4  ;;  %992 = vmatprep.subr.mxu1 %v301_v4  ;;  %v282_v21 = vld [vmem:[%s1585_s27 + $0x48] sm:$0xff]  ;;  %v276_v23 = vld [vmem:[%s1585_s27 + $0x18] sm:$0xff]  ;;  %v277_v24 = vld [vmem:[%s1585_s27 + $0x20] sm:$0xff] }
  0x68   : > { %940 = vmatpush3.msra.mxu0 %v301_v4  ;;  %1008 = vmatpush3.msra.mxu1 %v301_v4  ;;  %v284_v25 = vld [vmem:[%s1585_s27 + $0x58] sm:$0xff]  ;;  %v285_v26 = vld [vmem:[%s1585_s27 + $0x60] sm:$0xff]  ;;  %v278_v27 = vld [vmem:[%s1585_s27 + $0x28] sm:$0xff]  ;;  %s1651_s13 = scalar_lea.hbm %s1851_s2, %s832_s21 }
  0x69   : > { %941 = vmatprep.subr.mxu0 %v300_v5  ;;  %993 = vmatprep.subr.mxu1 %v300_v5  ;;  %v279_v28 = vld [vmem:[%s1585_s27 + $0x30] sm:$0xff]  ;;  %v286_v29 = vld [vmem:[%s1585_s27 + $0x68] sm:$0xff]  ;;  %v280_v31 = vld [vmem:[%s1585_s27 + $0x38] sm:$0xff] }
  0x6a   : > { %942 = vmatpush3.msra.mxu0 %v300_v5  ;;  %1009 = vmatpush3.msra.mxu1 %v300_v5  ;;  %v287_v30 = vld [vmem:[%s1585_s27 + $0x70] sm:$0xff]  ;;  %v288_v32 = vld [vmem:[%s1585_s27 + $0x78] sm:$0xff]  ;;  %s1203_s27 = scalar_lea.vmem %s1653_s1, 1024 }
  0x6b   : > { %943 = vmatprep.subr.mxu0 %v299_v6  ;;  %994 = vmatprep.subr.mxu1 %v299_v6  ;;  %p1204_p1 = scmp.ne.s32.totalorder %s1653_s1, %s1203_s27  ;;  %p1211_p2 = scmp.lt.s32.totalorder %s1209_s28, %s1203_s27 }
  0x6c   : > { %944 = vmatpush3.msra.mxu0 %v299_v6  ;;  %1010 = vmatpush3.msra.mxu1 %v299_v6 }
  0x6d   : > { %945 = vmatprep.subr.mxu0 %v298_v7  ;;  %995 = vmatprep.subr.mxu1 %v298_v7  ;;  %p1205_p4 = pnand %p1204_p1, %p1540_p0  ;;  %p1212_p5 = por %p1211_p2, %p1210_p8 }
  0x6e   : > { %946 = vmatpush3.msra.mxu0 %v298_v7  ;;  %1011 = vmatpush3.msra.mxu1 %v298_v7 }
  0x6f   : > { %947 = vmatprep.subr.mxu0 %v297_v8  ;;  %996 = vmatprep.subr.mxu1 %v297_v8  ;;  %p1206_p7 = pneg %p1205_p4 }
  0x70   : > { %948 = vmatpush3.msra.mxu0 %v297_v8  ;;  %1012 = vmatpush3.msra.mxu1 %v297_v8 }
  0x71   : > { %949 = vmatprep.subr.mxu0 %v296_v9  ;;  %997 = vmatprep.subr.mxu1 %v296_v9  ;;  %p1213_p9 = pnand %p1212_p5, %p1206_p7 }
  0x72   : > { %950 = vmatpush3.msra.mxu0 %v296_v9  ;;  %1013 = vmatpush3.msra.mxu1 %v296_v9 }
  0x73   : > { %951 = vmatprep.subr.mxu0 %v295_v10  ;;  %965 = vmatprep.mubr.f32.mxu0 %v273_v11 }
  0x74   : > { %952 = vmatpush3.msra.mxu0 %v295_v10  ;;  %998 = vmatprep.subr.mxu1 %v295_v10 }
  0x75   : > { %953 = vmatprep.subr.mxu0 %v294_v12  ;;  %1014 = vmatpush3.msra.mxu1 %v295_v10 }
  0x76   : > { %954 = vmatpush3.msra.mxu0 %v294_v12  ;;  %999 = vmatprep.subr.mxu1 %v294_v12 }
  0x77   : > { %955 = vmatprep.subr.mxu0 %v293_v13  ;;  %1015 = vmatpush3.msra.mxu1 %v294_v12 }
  0x78   : > { %956 = vmatpush3.msra.mxu0 %v293_v13  ;;  %1000 = vmatprep.subr.mxu1 %v293_v13 }
  0x79   : > { %957 = vmatprep.subr.mxu0 %v292_v14  ;;  %1016 = vmatpush3.msra.mxu1 %v293_v13 }
  0x7a   : > { %958 = vmatpush3.msra.mxu0 %v292_v14  ;;  %1001 = vmatprep.subr.mxu1 %v292_v14 }
  0x7b   : > { %959 = vmatprep.subr.mxu0 %v291_v15  ;;  %1017 = vmatpush3.msra.mxu1 %v292_v14 }
  0x7c   : > { %960 = vmatpush3.msra.mxu0 %v291_v15  ;;  %1002 = vmatprep.subr.mxu1 %v291_v15 }
  0x7d   : > { %961 = vmatprep.subr.mxu0 %v290_v16  ;;  %1018 = vmatpush3.msra.mxu1 %v291_v15 }
  0x7e   : > { %962 = vmatpush3.msra.mxu0 %v290_v16  ;;  %1003 = vmatprep.subr.mxu1 %v290_v16 }
  0x7f   : > { %963 = vmatprep.subr.mxu0 %v289_v17  ;;  %1019 = vmatpush3.msra.mxu1 %v290_v16 }
  0x80   : > { %964 = vmatpush3.msra.mxu0 %v289_v17  ;;  %1004 = vmatprep.subr.mxu1 %v289_v17 }
  0x81   : > { %966 = vmatmul.mubr.f32.vlgmr.msra.gmra.mxu0 %v274_v18  ;;  %1020 = vmatpush3.msra.mxu1 %v289_v17 }
  0x82   : > { %968 = vmatprep.mubr.f32.mxu0 %v275_v19  ;;  %977 = vmatprep.mubr.f32.mxu1 %v281_v20 }
  0x83   : > { %978 = vmatmul.mubr.f32.vlgmr.msra.gmra.mxu1 %v282_v21 }
  0x84   : > { %980 = vmatprep.mubr.f32.mxu1 %v283_v22 }
  0x85   : > { %969 = vmatmul.mubr.f32.gmra.mxu0 %v276_v23 }
  0x86   : > { %971 = vmatprep.mubr.f32.mxu0 %v277_v24 }
  0x87   : > { %981 = vmatmul.mubr.f32.gmra.mxu1 %v284_v25 }
  0x88   : > { %983 = vmatprep.mubr.f32.mxu1 %v285_v26 }
  0x89   : > { %972 = vmatmul.mubr.f32.gmra.mxu0 %v278_v27 }
  0x8a   : > { %974 = vmatprep.mubr.f32.mxu0 %v279_v28 }
  0x8b   : > { %984 = vmatmul.mubr.f32.gmra.mxu1 %v286_v29 }
  0x8c   : > { %986 = vmatprep.mubr.f32.mxu1 %v287_v30 }
  0x8d   : > { %975 = vmatmul.mubr.f32.gmra.mxu0 %v280_v31 }
  0x8f   : > { %987 = vmatmul.mubr.f32.gmra.mxu1 %v288_v32 }
 0x141   : > { %v967_v33 = vpop.f32.mrf.mxu0 }
 0x142   : > { %v556_v40 = vmul.f32 %v967_v33, %v967_v33 }
 0x143   : > { %v371_v34 = vpop.f32.mrf.mxu0  ;;  %v1622_v35 = vpop.f32.mrf.mxu1 }
 0x144   : > { %v857_v36 = vpack.c.bf16 %v967_v33, %v371_v34  ;;  %v555_v37 = vmul.f32 %v371_v34, %v371_v34  ;;  %v531_v41 = vadd.f32 %v967_v33, %v371_v34 }
 0x145   : > { %v970_v38 = vpop.f32.mrf.mxu0  ;;  %v411_v39 = vpop.f32.mrf.mxu1 }
 0x146   : > { %858 = vst [vmem:[%s1597_s9] sm:$0xff] %v857_v36   ;;  %v877_v42 = vpack.c.bf16 %v1622_v35, %v411_v39  ;;  %v571_v45 = vadd.f32 %v556_v40, %v555_v37  ;;  %v558_v51 = vmul.f32 %v970_v38, %v970_v38  ;;  %v563_v16 = vmul.f32 %v411_v39, %v411_v39 }
 0x147   : > { %v381_v43 = vpop.f32.mrf.mxu0  ;;  %v1626_v44 = vpop.f32.mrf.mxu1 }
 0x148   : > { %v862_v46 = vpack.c.bf16 %v970_v38, %v381_v43  ;;  %v532_v47 = vadd.f32 %v531_v41, %v381_v43  ;;  %v557_v48 = vmul.f32 %v381_v43, %v381_v43  ;;  %897 = vst [vmem:[%s1597_s9 + $0x20] sm:$0xff] %v877_v42  }
 0x149   : > { %v973_v49 = vpop.f32.mrf.mxu0  ;;  %v1631_v50 = vpop.f32.mrf.mxu1 }
 0x14a   : > { %894 = vst [vmem:[%s1597_s9 + $0x8] sm:$0xff] %v862_v46   ;;  %v572_v52 = vadd.f32 %v571_v45, %v557_v48  ;;  %v533_v53 = vadd.f32 %v970_v38, %v532_v47  ;;  %v882_v54 = vpack.c.bf16 %v1626_v44, %v1631_v50  ;;  %v560_v63 = vmul.f32 %v973_v49, %v973_v49 }
 0x14b   : > { %v391_v55 = vpop.f32.mrf.mxu0  ;;  %v1636_v56 = vpop.f32.mrf.mxu1 }
 0x14c   : > { %v867_v57 = vpack.c.bf16 %v973_v49, %v391_v55  ;;  %v534_v58 = vadd.f32 %v533_v53, %v391_v55  ;;  %v559_v59 = vmul.f32 %v391_v55, %v391_v55  ;;  %v573_v60 = vadd.f32 %v572_v52, %v558_v51  ;;  %898 = vst [vmem:[%s1597_s9 + $0x28] sm:$0xff] %v882_v54  }
 0x14d   : > { %v976_v61 = vpop.f32.mrf.mxu0  ;;  %v1639_v62 = vpop.f32.mrf.mxu1 }
 0x14e   : > { %895 = vst [vmem:[%s1597_s9 + $0x10] sm:$0xff] %v867_v57   ;;  %v574_v0 = vadd.f32 %v573_v60, %v559_v59  ;;  %v535_v1 = vadd.f32 %v973_v49, %v534_v58  ;;  %v887_v2 = vpack.c.bf16 %v1636_v56, %v1639_v62  ;;  %v562_v10 = vmul.f32 %v976_v61, %v976_v61 }
 0x14f   : > { %v401_v3 = vpop.f32.mrf.mxu0  ;;  %v1645_v4 = vpop.f32.mrf.mxu1 }
 0x150   : > { %v872_v5 = vpack.c.bf16 %v976_v61, %v401_v3  ;;  %v536_v6 = vadd.f32 %v535_v1, %v401_v3  ;;  %v561_v7 = vmul.f32 %v401_v3, %v401_v3  ;;  %v575_v8 = vadd.f32 %v574_v0, %v560_v63  ;;  %899 = vst [vmem:[%s1597_s9 + $0x30] sm:$0xff] %v887_v2  }
 0x151   : > { %v441_v9 = vpop.f32.mrf.mxu1 }
 0x152   : > { %896 = vst [vmem:[%s1597_s9 + $0x18] sm:$0xff] %v872_v5   ;;  %v537_v11 = vadd.f32 %v976_v61, %v536_v6  ;;  %v576_v12 = vadd.f32 %v575_v8, %v561_v7  ;;  %v892_v13 = vpack.c.bf16 %v1645_v4, %v441_v9 }
 0x154   : > { %v577_v14 = vadd.f32 %v576_v12, %v562_v10  ;;  %v538_v15 = vadd.f32 %v537_v11, %v411_v39  ;;  %900 = vst [vmem:[%s1597_s9 + $0x38] sm:$0xff] %v892_v13  }
 0x155   : > { %1216 = shalt.err (!%p1213_p9)
}
 0x156   : > { %s1217_s9 = scalar_lea.hbm %s1651_s13, 1024  ;;  %s1221_s21 = scalar_lea.hbm %s1851_s2, 4096 }
 0x157   : > { %p1218_p11 = scmp.ne.s32.totalorder %s1651_s13, %s1217_s9  ;;  %p1222_p6 = scmp.lt.s32.totalorder %s1651_s13, %s1851_s2 }
 0x158   : > { %p1223_p3 = scmp.lt.s32.totalorder %s1221_s21, %s1217_s9 }
 0x159   : > { %p1219_p10 = pnand %p1218_p11, %p1540_p0 }
 0x15a   : > { %p1224_p12 = por %p1223_p3, %p1222_p6 }
 0x15b   : > { %p1220_p13 = pneg %p1219_p10 }
 0x15d   : > { %p1225_p1 = pnand %p1224_p12, %p1220_p13 }
 0x15f   : > { %1228 = shalt.err (!%p1225_p1)
}
 0x160   : > { %s1391_s27 = smov 64   ;;  %s1392_s3 = smov 4   ;;  %v564_v17 = vmul.f32 %v1622_v35, %v1622_v35  ;;  %v578_v18 = vadd.f32 %v577_v14, %v563_v16  ;;  %v539_v19 = vadd.f32 %v1622_v35, %v538_v15  ;;  %v565_v21 = vmul.f32 %v1631_v50, %v1631_v50  ;;  %v530_v48 = vld [vmem:[%s1599_s29] sm:$0x1] }
 0x161   : > { %1027 = dma.vmem_to_hbm [thread:$0]  (%p1540_p0), %s1653_s1, 1024, %s1651_s13, %s595_s14, %s1391_s27, %s1391_s27, %s1392_s3   ;;  %v566_v23 = vmul.f32 %v1626_v44, %v1626_v44  ;;  %v567_v27 = vmul.f32 %v1639_v62, %v1639_v62  ;;  %v568_v29 = vmul.f32 %v1636_v56, %v1636_v56  ;;  %v569_v33 = vmul.f32 %v441_v9, %v441_v9 }
 0x162   : > { %v540_v20 = vadd.f32 %v539_v19, %v1631_v50  ;;  %v579_v22 = vadd.f32 %v578_v18, %v564_v17  ;;  %v570_v35 = vmul.f32 %v1645_v4, %v1645_v4  ;;  %s599_s11 = sand.u32 1, %s1474_s26   ;;  %s833_s1 = sshll.u32 %s1371_s22, 4  ;;  %v554_v51 = vld [vmem:[%s1601_s12] sm:$0x1] }
 0x163   : > { %s635_s4 = sshll.u32 %s1599_s29, 4  ;;  %s1852_s13 = sld [smem:[#allocation17_spill]]  ;;  %s1710_s4 = int_to_ptr.vmem [resolvable:$true] %s635_s4 }
 0x164   : > { %v580_v24 = vadd.f32 %v579_v22, %v565_v21  ;;  %v541_v25 = vadd.f32 %v1626_v44, %v540_v20  ;;  %s648_s14 = sshll.u32 %s1601_s12, 4  ;;  %s1853_s9 = sld [smem:[#allocation23_spill]]  ;;  %s1718_s14 = int_to_ptr.vmem [resolvable:$true] %s648_s14 }
 0x165   : > { %s1854_s10 = sld [smem:[#allocation24_spill]]  ;;  %s1720_s18 = scalar_lea.sflag [#allocation9], %s599_s11 }
 0x166   : > { %v542_v26 = vadd.f32 %v541_v25, %v1639_v62  ;;  %v581_v28 = vadd.f32 %v580_v24, %v566_v23  ;;  %s1229_s5 = scalar_lea.vmem %s1710_s4, 16  ;;  %s1393_s27 = smov [#allocation8]  }
 0x167   : > { %p1230_p0 = scmp.ne.s32.totalorder %s1710_s4, %s1229_s5  ;;  %s1233_s3 = sshll.u32 %s1393_s27, 4  ;;  %s1234_s3 = int_to_ptr.vmem [resolvable:$false] %s1233_s3 }
 0x168   : > { %v582_v30 = vadd.f32 %v581_v28, %v567_v27  ;;  %v543_v31 = vadd.f32 %v1636_v56, %v542_v26  ;;  %s1235_s7 = scalar_lea.vmem %s1234_s3, 32  ;;  %p1236_p2 = scmp.lt.s32.totalorder %s1710_s4, %s1234_s3 }
 0x169   : > { %p1855_p4 = scmp.ne.s32.totalorder %s1852_s13, 0  ;;  %p1237_p5 = scmp.lt.s32.totalorder %s1235_s7, %s1229_s5 }
 0x16a   : > { %v544_v32 = vadd.f32 %v543_v31, %v441_v9  ;;  %v583_v34 = vadd.f32 %v582_v30, %v568_v29  ;;  %s1708_s15 = scalar_lea.hbm %s1853_s9, %s833_s1 }
 0x16b   : > { %s1716_s21 = scalar_lea.hbm %s1854_s10, %s833_s1  ;;  %p1231_p7 = pnand %p1230_p0, %p1855_p4 }
 0x16c   : > { %v545_v36 = vadd.f32 %v1645_v4, %v544_v32  ;;  %v584_v37 = vadd.f32 %v583_v34, %v569_v33  ;;  %p1238_p9 = por %p1237_p5, %p1236_p2 }
 0x16d   : > { %p1232_p8 = pneg %p1231_p7 }
 0x16e   : > { %v546_v38 = vrot.slane %v545_v36, 4  ;;  %v585_v39 = vadd.f32 %v584_v37, %v570_v35 }
 0x16f   : > { %p1239_p11 = pnand %p1238_p9, %p1232_p8 }
 0x170   : > { %v547_v40 = vadd.f32 %v546_v38, %v545_v36  ;;  %v586_v41 = vrot.slane %v585_v39, 4 }
 0x172   : > { %v548_v42 = vrot.slane %v547_v40, 2  ;;  %v587_v43 = vadd.f32 %v586_v41, %v585_v39 }
 0x174   : > { %v549_v44 = vadd.f32 %v548_v42, %v547_v40  ;;  %v588_v45 = vrot.slane %v587_v43, 2 }
 0x176   : > { %v589_v46 = vadd.f32 %v588_v45, %v587_v43  ;;  %v550_v47 = vrot.slane %v549_v44, 1 }
 0x178   : > { %v551_v49 = vadd.f32 %v550_v47, %v549_v44  ;;  %v590_v50 = vrot.slane %v589_v46, 1 }
 0x17a   : > { %v552_v52 = vadd.f32 %v551_v49, %v530_v48  ;;  %v591_v53 = vadd.f32 %v590_v50, %v589_v46 }
 0x17c   : > { %553 = vst [vmem:[%s1599_s29] sm:$0x1] %v552_v52  ;;  %v592_v54 = vadd.f32 %v591_v53, %v554_v51 }
 0x17d   : > { %1242 = shalt.err (!%p1239_p11)
}
 0x17e   : > { %s1243_s29 = scalar_lea.hbm %s1708_s15, 16  ;;  %s1247_s28 = scalar_lea.hbm %s1853_s9, 32 }
 0x17f   : > { %p1244_p10 = scmp.ne.s32.totalorder %s1708_s15, %s1243_s29  ;;  %p1248_p3 = scmp.lt.s32.totalorder %s1708_s15, %s1853_s9 }
 0x180   : > { %p1249_p12 = scmp.lt.s32.totalorder %s1247_s28, %s1243_s29 }
 0x181   : > { %p1245_p13 = pnand %p1244_p10, %p1855_p4 }
 0x182   : > { %p1250_p1 = por %p1249_p12, %p1248_p3 }
 0x183   : > { %p1246_p6 = pneg %p1245_p13 }
 0x185   : > { %p1251_p0 = pnand %p1250_p1, %p1246_p6 }
 0x187   : > { %1254 = shalt.err (!%p1251_p0)
}
 0x188   : > { %1028 = dma.vmem_to_hbm [thread:$0]  (%p1855_p4), %s1710_s4, 16, %s1708_s15, %s1720_s18   ;;  %593 = vst [vmem:[%s1601_s12] sm:$0x1] %v592_v54 }
 0x189   : > { %s1255_s5 = scalar_lea.vmem %s1718_s14, 16  ;;  %s1394_s27 = smov [#allocation10]  }
 0x18a   : > { %p1256_p7 = scmp.ne.s32.totalorder %s1718_s14, %s1255_s5  ;;  %s1259_s3 = sshll.u32 %s1394_s27, 4  ;;  %s1260_s3 = int_to_ptr.vmem [resolvable:$false] %s1259_s3 }
 0x18b   : > { %s1261_s7 = scalar_lea.vmem %s1260_s3, 32  ;;  %p1262_p5 = scmp.lt.s32.totalorder %s1718_s14, %s1260_s3 }
 0x18c   : > { %p1257_p8 = pnand %p1256_p7, %p1855_p4  ;;  %p1263_p9 = scmp.lt.s32.totalorder %s1261_s7, %s1255_s5 }
 0x18e   : > { %p1258_p2 = pneg %p1257_p8  ;;  %p1264_p11 = por %p1263_p9, %p1262_p5 }
 0x190   : > { %p1265_p10 = pnand %p1264_p11, %p1258_p2 }
 0x192   : > { %1268 = shalt.err (!%p1265_p10)
}
 0x193   : > { %s1269_s4 = scalar_lea.hbm %s1716_s21, 16  ;;  %s1273_s29 = scalar_lea.hbm %s1854_s10, 32 }
 0x194   : > { %p1270_p13 = scmp.ne.s32.totalorder %s1716_s21, %s1269_s4  ;;  %p1274_p12 = scmp.lt.s32.totalorder %s1716_s21, %s1854_s10 }
 0x195   : > { %p1275_p1 = scmp.lt.s32.totalorder %s1273_s29, %s1269_s4 }
 0x196   : > { %p1271_p6 = pnand %p1270_p13, %p1855_p4 }
 0x197   : > { %p1276_p0 = por %p1275_p1, %p1274_p12 }
 0x198   : > { %p1272_p3 = pneg %p1271_p6 }
 0x19a   : > { %p1277_p7 = pnand %p1276_p0, %p1272_p3 }
 0x19c   : > { %1280 = shalt.err (!%p1277_p7)
}
 0x19d   : > { %1029 = dma.vmem_to_hbm [thread:$0]  (%p1855_p4), %s1718_s14, 16, %s1716_s21, %s1720_s18  }
 0x19e PF: > { %s1856_s28 = sld [smem:[#allocation15_spill]]  ;;  %p1054_p8 = scmp.ge.s32.totalorder %s1383_s25, 2 }
 0x19f   : > { %s1857_s22 = sld [smem:[#allocation16_spill]] }
 0x1a4   : > { %s660_s26 = sand.u32 1, %s1856_s28  }
 0x1a5   : > { %p1858_p2 = scmp.ne.s32.totalorder %s1857_s22, 0  ;;  %s661_s5 = scalar_lea.sflag [#allocation4], %s660_s26 }
 0x1a7   : > { %p1042_p5 = pnand %p1054_p8, %p1858_p2 }
 0x1a9   : > { %p1043_p9 = pneg %p1042_p5 }
 0x1ab   : > { %1334 = dma.done.wait (%p1043_p9), %s661_s5, 1024  }
 0x1ac   : > { %1336 = vsyncadd (%p1043_p9), %s661_s5, 4294966272  ;;  %s1859_s27 = sadd.s32 4294967294, %s1383_s25   ;;  %s1860_s3 = sld [smem:[#allocation18_spill]] }
 0x1ad   : > { %s669_s13 = sand.u32 1, %s1859_s27  }
 0x1ae   : > { %s670_s14 = scalar_lea.sflag [#allocation9], %s669_s13 }
 0x1b2   : > { %p1861_p11 = scmp.ne.s32.totalorder %s1860_s3, 0 }
 0x1b4   : > { %p1045_p10 = pnand %p1054_p8, %p1861_p11 }
 0x1b6   : > { %p1046_p13 = pneg %p1045_p10 }
 0x1b8   : > { %1338 = dma.done.wait (%p1046_p13), %s670_s14, 32  }
 0x1b9   : > { %1340 = vsyncadd (%p1046_p13), %s670_s14, 4294967264  ;;  %s25_s25 = sadd.s32 1, %s1383_s25   ;;  %s1862_s7 = sld [smem:[#allocation19_spill]] }
 0x1ba   : > { %p22_p4 = scmp.ge.s32.totalorder %s25_s25, 6   ;;  %s1863_s15 = smov %s1347_s16 }
 0x1bb   : > { %s1864_s16 = smov %s1351_s17  ;;  %s1865_s17 = smov %s1554_s6 }
 0x1bc   : > { %s1866_s18 = smov %s1359_s19  ;;  %s1867_s19 = smov %s1363_s20 }
 0x1bd   : > { %s1868_s20 = smov %s1557_s30  ;;  %s1869_s21 = smov %s1375_s23 }
 0x1be   : > { %s1870_s22 = smov %s1379_s24  ;;  %s1872_s24 = smov %s1878_s8 }
 0x1bf   : > { %s1871_s23 = smov %s1862_s7  ;;  %24 = sbr.rel (!%p22_p4) target bundleno = 17 (0x11), region = 113 }
 0x1c4   :  { %682 = vsyncpa [#allocation3], 1 }
 0x1c5   :  { %684 = vsyncpa [#allocation3 + $0x1], 1 }
 0x1c6   :  { %685 = vsyncpa [#allocation6], 1 }
 0x1c7   :  { %686 = vsyncpa [#allocation4], 1 }
 0x1c8   :  { %688 = vsyncpa [#allocation4 + $0x1], 1 }
 0x1c9   :  { %689 = vsyncpa [#allocation9], 1 }
 0x1ca   :  { %691 = vsyncpa [#allocation9 + $0x1], 1 }

</bundles_post_ra>
